<compile_context>
chip_gen: v5e
topology: v5e:2x2
jax: 0.10.0
libtpu: 0.0.40
codegen_flags: <defaults>
</compile_context>

<pallas_src>
import jax
import jax.numpy as jnp
from jax.experimental import pallas as pl
from jax.experimental.pallas import tpu as pltpu

DIM_FROM = 3
DIM_TO = 2


def _linear1_relu_kernel(w_ref, b_ref, x_ref, o_ref):
    """One batch tile: x_ref [DIM_FROM, TILE_B] -> o_ref [DIM_TO, TILE_B].

    w_ref: [DIM_TO, DIM_FROM] f32 in SMEM; b_ref: [DIM_TO] f32 in SMEM.
    y[j, :] = relu(sum_k w[j, k] * x[k, :] + b[j])   -- pure VPU FMAs, no MXU.
    """
    x = x_ref[...].astype(jnp.float32)              # [DIM_FROM, TILE_B], lane-dense
    rows = []
    for j in range(DIM_TO):                         # static unroll (2 output rows)
        acc = w_ref[j, 0] * x[0:1, :]
        for k in range(1, DIM_FROM):                # static unroll (3 FMAs per row)
            acc = acc + w_ref[j, k] * x[k:k + 1, :]
        acc = acc + b_ref[j]
        rows.append(jnp.maximum(acc, 0.0))          # ReLU on the VPU
    o_ref[...] = jnp.concatenate(rows, axis=0).astype(o_ref.dtype)


def linear1_relu(x, weight, bias, *, tile_b=512):
    """x: [B, DIM_FROM] f32; weight: [DIM_TO, DIM_FROM]; bias: [DIM_TO]."""
    B = x.shape[0]
    # Batch tile: a multiple of 128 lanes, capped at tile_b; pad B up to a tile
    # multiple so every block is full (padding is sliced off after the call).
    tile = min(tile_b, 128 * pl.cdiv(B, 128))
    b_pad = tile * pl.cdiv(B, tile)

    x_t = jnp.pad(x.T, ((0, 0), (0, b_pad - B)))    # [DIM_FROM, B_pad]
    w = weight.astype(jnp.float32)                  # [DIM_TO, DIM_FROM] -> SMEM
    b = bias.astype(jnp.float32)                    # [DIM_TO]           -> SMEM

    out_t = pl.pallas_call(
        _linear1_relu_kernel,
        out_shape=jax.ShapeDtypeStruct((DIM_TO, b_pad), x.dtype),
        grid=(b_pad // tile,),
        in_specs=[
            pl.BlockSpec(memory_space=pltpu.MemorySpace.SMEM),   # weight scalars
            pl.BlockSpec(memory_space=pltpu.MemorySpace.SMEM),   # bias scalars
            pl.BlockSpec((DIM_FROM, tile), lambda i: (0, i)),    # x.T batch tile
        ],
        out_specs=pl.BlockSpec((DIM_TO, tile), lambda i: (0, i)),
        compiler_params=pltpu.CompilerParams(
            dimension_semantics=("parallel",)),
    )(w, b, x_t)

    return out_t[:, :B].T                           # back to [B, DIM_TO]


if __name__ == "__main__":
    key = jax.random.PRNGKey(0)
    kx, kw, kb = jax.random.split(key, 3)

    B = 8
    # Deterministic parameter init (PyTorch nn.Linear-style uniform bounds).
    bound = 1.0 / (DIM_FROM ** 0.5)
    weight = jax.random.uniform(kw, (DIM_TO, DIM_FROM), jnp.float32, -bound, bound)
    bias = jax.random.uniform(kb, (DIM_TO,), jnp.float32, -bound, bound)
    x = jax.random.normal(kx, (B, DIM_FROM), jnp.float32)

    out = linear1_relu(x, weight, bias)
    out = jax.block_until_ready(out)

    ref = jnp.maximum(x @ weight.T + bias, 0.0)
    assert out.shape == (B, DIM_TO)
    assert jnp.allclose(out, ref, atol=1e-5, rtol=1e-5)

    print("KERNEL_OK")
</pallas_src>

<mosaic_0001>
module attributes {stable_mosaic.version = 11 : i64} {
  func.func @_linear1_relu_kernel(%arg0: i32, %arg1: memref<2x3xf32, #tpu.memory_space<smem>>, %arg2: memref<2xf32, #tpu.memory_space<smem>>, %arg3: memref<3x128xf32, #tpu.memory_space<vmem>>, %arg4: memref<2x128xf32, #tpu.memory_space<vmem>>) attributes {dimension_semantics = [#tpu.dimension_semantics<parallel>], iteration_bounds = array<i64: 1>, scalar_prefetch = 0 : i64, scratch_operands = 0 : i64, tpu.core_type = #tpu.core_type<tc>, window_params = [{transform_indices = @transform_0, window_bounds = array<i64: 2, 3>}, {transform_indices = @transform_1, window_bounds = array<i64: 2>}, {transform_indices = @transform_2, window_bounds = array<i64: 3, 128>}, {transform_indices = @transform_3, window_bounds = array<i64: 2, 128>}]} {
    %c0 = arith.constant 0 : index
    %c0_0 = arith.constant 0 : index
    %0 = vector.load %arg3[%c0, %c0_0] : memref<3x128xf32, #tpu.memory_space<vmem>>, vector<3x128xf32>
    %c0_1 = arith.constant 0 : index
    %c0_2 = arith.constant 0 : index
    %1 = memref.load %arg1[%c0_1, %c0_2] : memref<2x3xf32, #tpu.memory_space<smem>>
    %2 = vector.extract_strided_slice %0 {offsets = [0, 0], sizes = [1, 128], strides = [1, 1]} : vector<3x128xf32> to vector<1x128xf32>
    %3 = vector.broadcast %1 : f32 to vector<1x128xf32>
    %4 = arith.mulf %3, %2 : vector<1x128xf32>
    %c0_3 = arith.constant 0 : index
    %c1 = arith.constant 1 : index
    %5 = memref.load %arg1[%c0_3, %c1] : memref<2x3xf32, #tpu.memory_space<smem>>
    %6 = vector.extract_strided_slice %0 {offsets = [1, 0], sizes = [1, 128], strides = [1, 1]} : vector<3x128xf32> to vector<1x128xf32>
    %7 = vector.broadcast %5 : f32 to vector<1x128xf32>
    %8 = arith.mulf %7, %6 : vector<1x128xf32>
    %9 = arith.addf %4, %8 : vector<1x128xf32>
    %c0_4 = arith.constant 0 : index
    %c2 = arith.constant 2 : index
    %10 = memref.load %arg1[%c0_4, %c2] : memref<2x3xf32, #tpu.memory_space<smem>>
    %11 = vector.extract_strided_slice %0 {offsets = [2, 0], sizes = [1, 128], strides = [1, 1]} : vector<3x128xf32> to vector<1x128xf32>
    %12 = vector.broadcast %10 : f32 to vector<1x128xf32>
    %13 = arith.mulf %12, %11 : vector<1x128xf32>
    %14 = arith.addf %9, %13 : vector<1x128xf32>
    %c0_5 = arith.constant 0 : index
    %15 = memref.load %arg2[%c0_5] : memref<2xf32, #tpu.memory_space<smem>>
    %16 = vector.broadcast %15 : f32 to vector<1x128xf32>
    %17 = arith.addf %14, %16 : vector<1x128xf32>
    %cst = arith.constant 0.000000e+00 : f32
    %18 = vector.broadcast %cst : f32 to vector<1x128xf32>
    %19 = arith.maximumf %17, %18 : vector<1x128xf32>
    %c1_6 = arith.constant 1 : index
    %c0_7 = arith.constant 0 : index
    %20 = memref.load %arg1[%c1_6, %c0_7] : memref<2x3xf32, #tpu.memory_space<smem>>
    %21 = vector.extract_strided_slice %0 {offsets = [0, 0], sizes = [1, 128], strides = [1, 1]} : vector<3x128xf32> to vector<1x128xf32>
    %22 = vector.broadcast %20 : f32 to vector<1x128xf32>
    %23 = arith.mulf %22, %21 : vector<1x128xf32>
    %c1_8 = arith.constant 1 : index
    %c1_9 = arith.constant 1 : index
    %24 = memref.load %arg1[%c1_8, %c1_9] : memref<2x3xf32, #tpu.memory_space<smem>>
    %25 = vector.extract_strided_slice %0 {offsets = [1, 0], sizes = [1, 128], strides = [1, 1]} : vector<3x128xf32> to vector<1x128xf32>
    %26 = vector.broadcast %24 : f32 to vector<1x128xf32>
    %27 = arith.mulf %26, %25 : vector<1x128xf32>
    %28 = arith.addf %23, %27 : vector<1x128xf32>
    %c1_10 = arith.constant 1 : index
    %c2_11 = arith.constant 2 : index
    %29 = memref.load %arg1[%c1_10, %c2_11] : memref<2x3xf32, #tpu.memory_space<smem>>
    %30 = vector.extract_strided_slice %0 {offsets = [2, 0], sizes = [1, 128], strides = [1, 1]} : vector<3x128xf32> to vector<1x128xf32>
    %31 = vector.broadcast %29 : f32 to vector<1x128xf32>
    %32 = arith.mulf %31, %30 : vector<1x128xf32>
    %33 = arith.addf %28, %32 : vector<1x128xf32>
    %c1_12 = arith.constant 1 : index
    %34 = memref.load %arg2[%c1_12] : memref<2xf32, #tpu.memory_space<smem>>
    %35 = vector.broadcast %34 : f32 to vector<1x128xf32>
    %36 = arith.addf %33, %35 : vector<1x128xf32>
    %cst_13 = arith.constant 0.000000e+00 : f32
    %37 = vector.broadcast %cst_13 : f32 to vector<1x128xf32>
    %38 = arith.maximumf %36, %37 : vector<1x128xf32>
    %39 = tpu.concatenate %19, %38 in 0 : vector<1x128xf32>, vector<1x128xf32> -> vector<2x128xf32>
    %c0_14 = arith.constant 0 : index
    %c0_15 = arith.constant 0 : index
    %40 = vector.load %arg4[%c0_14, %c0_15] : memref<2x128xf32, #tpu.memory_space<vmem>>, vector<2x128xf32>
    tpu.vector_store %arg4[%c0_14, %c0_15], %39 {strides = array<i32>} : memref<2x128xf32, #tpu.memory_space<vmem>>, vector<2x128xf32>,
    return
  }
  func.func @transform_0(%arg0: i32) -> (i32, i32) {
    %c0_i32 = arith.constant 0 : i32
    %c0_i32_0 = arith.constant 0 : i32
    %c0_i32_1 = arith.constant 0 : i32
    return %c0_i32, %c0_i32_0 : i32, i32
  }
  func.func @transform_1(%arg0: i32) -> i32 {
    %c0_i32 = arith.constant 0 : i32
    %c0_i32_0 = arith.constant 0 : i32
    return %c0_i32 : i32
  }
  func.func @transform_2(%arg0: i32) -> (i32, i32) {
    %c0_i32 = arith.constant 0 : i32
    %c0_i32_0 = arith.constant 0 : i32
    return %c0_i32, %arg0 : i32, i32
  }
  func.func @transform_3(%arg0: i32) -> (i32, i32) {
    %c0_i32 = arith.constant 0 : i32
    %c0_i32_0 = arith.constant 0 : i32
    return %c0_i32, %arg0 : i32, i32
  }
}

</mosaic_0001>

<bundles_post_ra>
// kernel: tpu_custom_call.1
= control target key start
LH: loop header
LB: loop body
LE: loop exit
PB: predicated region body
PF: predicated region fallthrough
CT: control target
= control target key end

     0   :  { %8 = vsyncpa [#allocation5], 0  ;;  %s248_s0 = inlined_call_operand.hbm [shape: f32[2,3], index: 0, kind: input, shape index: {}]   ;;  %s249_s1 = inlined_call_operand.hbm [shape: f32[2], index: 1, kind: input, shape index: {}]   ;;  %s250_s2 = inlined_call_operand.hbm [shape: f32[3,128], index: 2, kind: input, shape index: {}]   ;;  %s251_s3 = inlined_call_operand.hbm [shape: f32[2,128], index: 3, kind: output, shape index: {}]  }
   0x1   :  { %9 = vsyncpa [#allocation7], 0 }
   0x2   :  { %10 = vsyncpa [#allocation3], 0 }
   0x3   :  { %11 = vsyncpa [#allocation4], 0  ;;  %s17_s14 = sshll.u32 %s248_s0, 4  ;;  %s26_s17 = sshll.u32 %s249_s1, 4  ;;  %s18_s14 = int_to_ptr.hbm [resolvable:$true] %s17_s14  ;;  %s27_s17 = int_to_ptr.hbm [resolvable:$true] %s26_s17 }
   0x4   :  { %s212_s18 = smov [#allocation2]   ;;  %s213_s19 = smov [#allocation6]  }
   0x5   :  { %20 = dma.hbm_to_smem %s18_s14, 32, %s212_s18, [#allocation5]  }
   0x6   :  { %29 = dma.hbm_to_smem %s27_s17, 16, %s213_s19, [#allocation7]  }
   0x7   :  { %s35_s22 = sshll.u32 %s250_s2, 4  ;;  %s214_s23 = smov [#allocation8]   ;;  %s36_s22 = int_to_ptr.hbm [resolvable:$true] %s35_s22 }
   0x8   :  { %s37_s24 = sshll.u32 %s214_s23, 4  ;;  %s38_s24 = int_to_ptr.vmem [resolvable:$true] %s37_s24 }
   0x9   :  { %40 = dma.hbm_to_vmem [thread:$0]  %s36_s22, 64, %s38_s24, [#allocation3]  }
   0xa   :  { %204 = dma.done.wait [#allocation5], 32  }
   0xb   :  { %205 = vsyncadd [#allocation5], 4294967264 }
   0xc   :  { %206 = dma.done.wait [#allocation7], 16  }
   0xd   :  { %207 = vsyncadd [#allocation7], 4294967280 }
   0xe   :  { %208 = dma.done.wait [#allocation3], 64  }
   0xf   :  { %209 = vsyncadd [#allocation3], 4294967232 }
  0x10   :  { %53 = sfence }
  0x11   :  { %s55_s0 = sld [smem:[#allocation2]]  ;;  %v54_v1 = vld [vmem:[#allocation8] sm:$0x7]  ;;  %s215_s30 = smov [#allocation9]   ;;  %vm100_vm0 = vcmask 1040384  }
  0x12   :  { %s122_s1 = sld [smem:[#allocation2 + $0x1]]  ;;  %s108_s4 = sshll.u32 %s215_s30, 4  ;;  %s109_s4 = int_to_ptr.vmem [resolvable:$true] %s108_s4 }
  0x13   :  { %s123_s25 = sld [smem:[#allocation2 + $0x2]]  ;;  %s110_s7 = sshll.u32 %s251_s3, 4  ;;  %s111_s7 = int_to_ptr.hbm [resolvable:$true] %s110_s7 }
  0x14   :  { %s124_s26 = sld [smem:[#allocation2 + $0x80]] }
  0x15   :  { %s125_s27 = sld [smem:[#allocation2 + $0x81]] }
  0x16   :  { %s126_s28 = sld [smem:[#allocation2 + $0x82]] }
  0x17   :  { %v56_v0 = vstv %s55_s0  ;;  %s72_s2 = sld [smem:[#allocation6]] }
  0x18   :  { %v59_v2 = vstv %s122_s1  ;;  %v57_v3 = vmul.f32 %v56_v0, %v54_v1  ;;  %s127_s29 = sld [smem:[#allocation6 + $0x1]] }
  0x19   :  { %v60_v4 = vmul.f32 %v59_v2, %v54_v1  ;;  %v66_v5 = vstv %s123_s25 }
  0x1a   :  { %v67_v6 = vmul.f32 %v66_v5, %v54_v1  ;;  %v77_v8 = vstv %s124_s26 }
  0x1b   :  { %v62_v7 = vrot.slane %v60_v4, 1  ;;  %v80_v10 = vstv %s125_s27  ;;  %v78_v12 = vmul.f32 %v77_v8, %v54_v1 }
  0x1c   :  { %v69_v9 = vrot.slane %v67_v6, 2  ;;  %v81_v13 = vmul.f32 %v80_v10, %v54_v1  ;;  %v87_v14 = vstv %s126_s28 }
  0x1d   :  { %v64_v11 = vadd.f32 %v62_v7, %v57_v3  ;;  %v88_v15 = vmul.f32 %v87_v14, %v54_v1  ;;  %v73_v18 = vstv %s72_s2 }
  0x1e   :  { %v83_v17 = vrot.slane %v81_v13, 1  ;;  %v94_v21 = vstv %s127_s29 }
  0x1f   :  { %v71_v16 = vadd.f32 %v69_v9, %v64_v11  ;;  %v90_v19 = vrot.slane %v88_v15, 2 }
  0x20   :  { %v85_v20 = vadd.f32 %v83_v17, %v78_v12 }
  0x21   :  { %v74_v22 = vadd.f32 %v73_v18, %v71_v16 }
  0x22   :  { %v92_v23 = vadd.f32 %v90_v19, %v85_v20 }
  0x23   :  { %v75_v25 = vmax.f32 %v74_v22, 0.0 }
  0x24   :  { %v95_v24 = vadd.f32 %v94_v21, %v92_v23 }
  0x26   :  { %v96_v26 = vmax.f32 %v95_v24, 0.0 }
  0x28   :  { %v98_v27 = vrot.slane %v96_v26, 7 }
  0x2a   :  { %v101_v28 = vsel %vm100_vm0, %v75_v25, %v98_v27 }
  0x2b   :  { %102 = vst [vmem:[#allocation9] sm:$0x3] %v101_v28 }
  0x2c   :  { %113 = dma.vmem_to_hbm [thread:$0]  %s109_s4, 32, %s111_s7, [#allocation4]  }
  0x2d   :  { %210 = dma.done.wait [#allocation4], 32  }
  0x2e   :  { %211 = vsyncadd [#allocation4], 4294967264 }
  0x2f   :  { %118 = vsyncpa [#allocation3], 1 }
  0x30   :  { %119 = vsyncpa [#allocation4], 1 }
  0x31   :  { %120 = vsyncpa [#allocation5], 1 }
  0x32   :  { %121 = vsyncpa [#allocation7], 1 }

</bundles_post_ra>
